<compile_context>
chip_gen: v5e
topology: v5e:2x2
jax: 0.10.0
libtpu: 0.0.40
codegen_flags: <defaults>
</compile_context>

<pallas_src>
import math
import functools

import jax
import jax.numpy as jnp
from jax import lax
from jax.experimental import pallas as pl
from jax.experimental.pallas import tpu as pltpu


def _gelu(x):
    # matches the reference tanh-approx gelu exactly
    return 0.5 * x * (1.0 + jnp.tanh(math.sqrt(2.0 / math.pi) *
                                     (x + 0.044715 * x * x * x)))


def _layernorm(x, g, b, eps=1e-5):
    mu = jnp.mean(x, axis=-1, keepdims=True)
    var = jnp.mean((x - mu) ** 2, axis=-1, keepdims=True)
    return (x - mu) * lax.rsqrt(var + eps) * g + b


def block_kernel(n_head,
                 x_ref,
                 w_attn_ref, b_attn_ref, w_aproj_ref, b_aproj_ref,
                 g1_ref, beta1_ref,
                 w_fc_ref, b_fc_ref, w_mproj_ref, b_mproj_ref,
                 g2_ref, beta2_ref,
                 o_ref,
                 a_scratch):
    xb = x_ref[0]                       # (T, C) f32, current batch element
    T, C = xb.shape
    D = C // n_head

    x_bf = xb.astype(jnp.bfloat16)

    # ---------------- Attention ----------------
    # qkv projection: bf16 operands into the MXU, f32 accumulation.
    qkv = jnp.dot(x_bf, w_attn_ref[...],
                  preferred_element_type=jnp.float32) + b_attn_ref[0]   # (T, 3C)
    q = qkv[:, 0 * C:1 * C]
    k = qkv[:, 1 * C:2 * C]
    v = qkv[:, 2 * C:3 * C]

    row = lax.broadcasted_iota(jnp.int32, (T, T), 0)
    col = lax.broadcasted_iota(jnp.int32, (T, T), 1)
    causal = row >= col                                  # tril mask (bool)

    for h in range(n_head):                              # static, small n_head
        qh = q[:, h * D:(h + 1) * D].astype(jnp.bfloat16)
        kh = k[:, h * D:(h + 1) * D].astype(jnp.bfloat16)
        vh = v[:, h * D:(h + 1) * D].astype(jnp.bfloat16)
        # q . k^T, contracting last dims (no explicit transpose op)
        s = lax.dot_general(qh, kh, (((1,), (1,)), ((), ())),
                            preferred_element_type=jnp.float32)          # (T, T)
        # scale=False in the reference Block, so no / sqrt(D)
        s = jnp.where(causal, s, -1e9)
        s = s - jnp.max(s, axis=-1, keepdims=True)
        e = jnp.exp(s)
        p = e * pl.reciprocal(jnp.sum(e, axis=-1, keepdims=True), approx=True)
        # write each head's output into its static lane slice of the scratch
        a_scratch[:, h * D:(h + 1) * D] = jnp.dot(
            p.astype(jnp.bfloat16), vh, preferred_element_type=jnp.float32)

    a = jnp.dot(a_scratch[...].astype(jnp.bfloat16), w_aproj_ref[...],
                preferred_element_type=jnp.float32) + b_aproj_ref[0]

    # ---------------- ln_1(x + a) ----------------
    n = _layernorm(xb + a, g1_ref[0], beta1_ref[0])

    # ---------------- MLP ----------------
    hfc = _gelu(jnp.dot(n.astype(jnp.bfloat16), w_fc_ref[...],
                        preferred_element_type=jnp.float32) + b_fc_ref[0])
    m = jnp.dot(hfc.astype(jnp.bfloat16), w_mproj_ref[...],
                preferred_element_type=jnp.float32) + b_mproj_ref[0]

    # ---------------- ln_2(n + m) ----------------
    o_ref[0] = _layernorm(n + m, g2_ref[0], beta2_ref[0]).astype(o_ref.dtype)


def gpt_block(x, params, n_head):
    B, T, C = x.shape
    bf16 = jnp.bfloat16

    # Matmul weights in bf16 (halves HBM->VMEM traffic, native MXU path);
    # biases and LayerNorm parameters stay f32.
    weights = [
        params["w_attn"].astype(bf16), params["b_attn"],
        params["w_aproj"].astype(bf16), params["b_aproj"],
        params["g1"], params["beta1"],
        params["w_fc"].astype(bf16), params["b_fc"],
        params["w_mproj"].astype(bf16), params["b_mproj"],
        params["g2"], params["beta2"],
    ]

    # Weights are grid-invariant: keep one resident VMEM copy (no per-step
    # DMA, no double-buffering) via an unblocked VMEM memory-space spec.
    weight_spec = pl.BlockSpec(memory_space=pltpu.MemorySpace.VMEM)
    in_specs = [pl.BlockSpec((1, T, C), lambda b: (b, 0, 0))]
    in_specs += [weight_spec] * len(weights)

    # Advisory cost estimate so XLA schedules around the fused block sensibly.
    flops = B * (24 * T * C * C + 4 * T * T * C)
    transcendentals = B * (n_head * T * T + 4 * T * C + (n_head + 2) * T)
    bytes_accessed = (2 * x.size * x.dtype.itemsize
                      + sum(int(w.size) * w.dtype.itemsize for w in weights))

    return pl.pallas_call(
        functools.partial(block_kernel, n_head),
        out_shape=jax.ShapeDtypeStruct((B, T, C), x.dtype),
        grid=(B,),
        in_specs=in_specs,
        out_specs=pl.BlockSpec((1, T, C), lambda b: (b, 0, 0)),
        scratch_shapes=[pltpu.VMEM((T, C), jnp.float32)],   # merged-head buffer
        compiler_params=pltpu.CompilerParams(
            dimension_semantics=("parallel",),
            # above the 16 MiB (v5e) / 32 MiB (v6e, v7x) scoped defaults,
            # safely below every chip's physical VMEM.
            vmem_limit_bytes=48 * 1024 * 1024,
        ),
        cost_estimate=pl.CostEstimate(flops=flops,
                                      transcendentals=transcendentals,
                                      bytes_accessed=bytes_accessed),
    )(x, *weights)


def _dot_bf16(a, b):
    # mirrors the kernel's numerics: bf16 operands, f32 accumulation
    return jnp.dot(a.astype(jnp.bfloat16), b.astype(jnp.bfloat16),
                   preferred_element_type=jnp.float32)


def reference_block(x, params, n_head):
    """Pure-JAX replica of the PyTorch Block.forward (bf16-matmul numerics)."""
    B, T, C = x.shape
    D = C // n_head
    qkv = _dot_bf16(x, params["w_attn"]) + params["b_attn"][0]
    q, k, v = jnp.split(qkv, 3, axis=-1)

    def split_heads(t):  # (B,T,C) -> (B,H,T,D)
        return t.reshape(B, T, n_head, D).transpose(0, 2, 1, 3)

    qh, kh, vh = split_heads(q), split_heads(k), split_heads(v)
    w = jnp.einsum("bhqd,bhkd->bhqk",
                   qh.astype(jnp.bfloat16), kh.astype(jnp.bfloat16),
                   preferred_element_type=jnp.float32)
    mask = jnp.tril(jnp.ones((T, T), jnp.bool_))
    w = jnp.where(mask, w, -1e9)
    p = jax.nn.softmax(w, axis=-1)
    a = jnp.einsum("bhqk,bhkd->bhqd",
                   p.astype(jnp.bfloat16), vh.astype(jnp.bfloat16),
                   preferred_element_type=jnp.float32)
    a = a.transpose(0, 2, 1, 3).reshape(B, T, C)
    a = _dot_bf16(a, params["w_aproj"]) + params["b_aproj"][0]

    n = _layernorm(x + a, params["g1"][0], params["beta1"][0])
    h = _gelu(_dot_bf16(n, params["w_fc"]) + params["b_fc"][0])
    m = _dot_bf16(h, params["w_mproj"]) + params["b_mproj"][0]
    return _layernorm(n + m, params["g2"][0], params["beta2"][0])


if __name__ == "__main__":
    B, T, C, H = 2, 8, 32, 4          # batch, n_ctx, n_embd, n_head
    key = jax.random.PRNGKey(0)
    kx, k1, k2, k3, k4 = jax.random.split(key, 5)

    x = jax.random.normal(kx, (B, T, C), dtype=jnp.float32)

    params = {
        # Attention: c_attn (C -> 3C), c_proj (C -> C), std=0.02 init
        "w_attn":  0.02 * jax.random.normal(k1, (C, 3 * C), jnp.float32),
        "b_attn":  jnp.zeros((1, 3 * C), jnp.float32),
        "w_aproj": 0.02 * jax.random.normal(k2, (C, C), jnp.float32),
        "b_aproj": jnp.zeros((1, C), jnp.float32),
        # LayerNorm 1
        "g1":    jnp.ones((1, C), jnp.float32),
        "beta1": jnp.zeros((1, C), jnp.float32),
        # MLP: c_fc (C -> 4C), c_proj (4C -> C)
        "w_fc":    0.02 * jax.random.normal(k3, (C, 4 * C), jnp.float32),
        "b_fc":    jnp.zeros((1, 4 * C), jnp.float32),
        "w_mproj": 0.02 * jax.random.normal(k4, (4 * C, C), jnp.float32),
        "b_mproj": jnp.zeros((1, C), jnp.float32),
        # LayerNorm 2
        "g2":    jnp.ones((1, C), jnp.float32),
        "beta2": jnp.zeros((1, C), jnp.float32),
    }

    out = gpt_block(x, params, H)
    out = jax.block_until_ready(out)

    ref = reference_block(x, params, H)
    assert out.shape == (B, T, C)
    # bf16 matmul operands + approx reciprocal in softmax -> slightly looser
    # tolerance than a pure-f32 comparison.
    assert jnp.allclose(out, ref, rtol=2e-3, atol=2e-3), "mismatch vs reference"

    print("KERNEL_OK")
</pallas_src>

<mosaic_0001>
module attributes {stable_mosaic.version = 11 : i64} {
  func.func @block_kernel(%arg0: i32, %arg1: memref<1x8x32xf32, #tpu.memory_space<vmem>>, %arg2: memref<32x96xbf16, #tpu.memory_space<vmem>>, %arg3: memref<1x96xf32, #tpu.memory_space<vmem>>, %arg4: memref<32x32xbf16, #tpu.memory_space<vmem>>, %arg5: memref<1x32xf32, #tpu.memory_space<vmem>>, %arg6: memref<1x32xf32, #tpu.memory_space<vmem>>, %arg7: memref<1x32xf32, #tpu.memory_space<vmem>>, %arg8: memref<32x128xbf16, #tpu.memory_space<vmem>>, %arg9: memref<1x128xf32, #tpu.memory_space<vmem>>, %arg10: memref<128x32xbf16, #tpu.memory_space<vmem>>, %arg11: memref<1x32xf32, #tpu.memory_space<vmem>>, %arg12: memref<1x32xf32, #tpu.memory_space<vmem>>, %arg13: memref<1x32xf32, #tpu.memory_space<vmem>>, %arg14: memref<1x8x32xf32, #tpu.memory_space<vmem>>, %arg15: memref<8x32xf32, #tpu.memory_space<vmem>>) attributes {dimension_semantics = [#tpu.dimension_semantics<parallel>], iteration_bounds = array<i64: 2>, scalar_prefetch = 0 : i64, scratch_operands = 1 : i64, tpu.core_type = #tpu.core_type<tc>, window_params = [{transform_indices = @transform_0, window_bounds = array<i64: 1, 8, 32>}, {pipeline_mode = #tpu.pipeline_mode<synchronous>, transform_indices = @transform_1, window_bounds = array<i64: 32, 96>}, {pipeline_mode = #tpu.pipeline_mode<synchronous>, transform_indices = @transform_2, window_bounds = array<i64: 1, 96>}, {pipeline_mode = #tpu.pipeline_mode<synchronous>, transform_indices = @transform_3, window_bounds = array<i64: 32, 32>}, {pipeline_mode = #tpu.pipeline_mode<synchronous>, transform_indices = @transform_4, window_bounds = array<i64: 1, 32>}, {pipeline_mode = #tpu.pipeline_mode<synchronous>, transform_indices = @transform_5, window_bounds = array<i64: 1, 32>}, {pipeline_mode = #tpu.pipeline_mode<synchronous>, transform_indices = @transform_6, window_bounds = array<i64: 1, 32>}, {pipeline_mode = #tpu.pipeline_mode<synchronous>, transform_indices = @transform_7, window_bounds = array<i64: 32, 128>}, {pipeline_mode = #tpu.pipeline_mode<synchronous>, transform_indices = @transform_8, window_bounds = array<i64: 1, 128>}, {pipeline_mode = #tpu.pipeline_mode<synchronous>, transform_indices = @transform_9, window_bounds = array<i64: 128, 32>}, {pipeline_mode = #tpu.pipeline_mode<synchronous>, transform_indices = @transform_10, window_bounds = array<i64: 1, 32>}, {pipeline_mode = #tpu.pipeline_mode<synchronous>, transform_indices = @transform_11, window_bounds = array<i64: 1, 32>}, {pipeline_mode = #tpu.pipeline_mode<synchronous>, transform_indices = @transform_12, window_bounds = array<i64: 1, 32>}, {transform_indices = @transform_13, window_bounds = array<i64: 1, 8, 32>}]} {
    %c0 = arith.constant 0 : index
    %c0_0 = arith.constant 0 : index
    %c0_1 = arith.constant 0 : index
    %0 = vector.load %arg1[%c0, %c0_0, %c0_1] : memref<1x8x32xf32, #tpu.memory_space<vmem>>, vector<1x8x32xf32>
    %1 = vector.shape_cast %0 : vector<1x8x32xf32> to vector<8x32xf32>
    %2 = arith.truncf %1 : vector<8x32xf32> to vector<8x32xbf16>
    %c0_2 = arith.constant 0 : index
    %c0_3 = arith.constant 0 : index
    %3 = vector.load %arg2[%c0_2, %c0_3] : memref<32x96xbf16, #tpu.memory_space<vmem>>, vector<32x96xbf16>
    %cst = arith.constant dense<0.000000e+00> : vector<8x96xf32>
    %4 = tpu.matmul %2, %3, %cst {dimension_numbers = #tpu.dot_dimension_numbers<[1], [0], [0], [1], [0, 0, 1, 1], [], []>} : vector<8x32xbf16>, vector<32x96xbf16>, vector<8x96xf32> -> vector<8x96xf32>
    %c0_4 = arith.constant 0 : index
    %c0_5 = arith.constant 0 : index
    %5 = vector.load %arg3[%c0_4, %c0_5] : memref<1x96xf32, #tpu.memory_space<vmem>>, vector<1x96xf32>
    %6 = vector.shape_cast %5 : vector<1x96xf32> to vector<96xf32>
    %7 = vector.shape_cast %6 : vector<96xf32> to vector<1x96xf32>
    %8 = vector.broadcast %7 : vector<1x96xf32> to vector<8x96xf32>
    %9 = arith.addf %4, %8 : vector<8x96xf32>
    %10 = vector.extract_strided_slice %9 {offsets = [0, 0], sizes = [8, 32], strides = [1, 1]} : vector<8x96xf32> to vector<8x32xf32>
    %11 = vector.extract_strided_slice %9 {offsets = [0, 32], sizes = [8, 32], strides = [1, 1]} : vector<8x96xf32> to vector<8x32xf32>
    %12 = vector.extract_strided_slice %9 {offsets = [0, 64], sizes = [8, 32], strides = [1, 1]} : vector<8x96xf32> to vector<8x32xf32>
    %13 = tpu.iota {dimensions = array<i32: 0>} : vector<8x8xi32>
    %14 = tpu.iota {dimensions = array<i32: 1>} : vector<8x8xi32>
    %15 = arith.cmpi sge, %13, %14 : vector<8x8xi32>
    %16 = vector.extract_strided_slice %10 {offsets = [0, 0], sizes = [8, 8], strides = [1, 1]} : vector<8x32xf32> to vector<8x8xf32>
    %17 = arith.truncf %16 : vector<8x8xf32> to vector<8x8xbf16>
    %18 = vector.extract_strided_slice %11 {offsets = [0, 0], sizes = [8, 8], strides = [1, 1]} : vector<8x32xf32> to vector<8x8xf32>
    %19 = arith.truncf %18 : vector<8x8xf32> to vector<8x8xbf16>
    %20 = vector.extract_strided_slice %12 {offsets = [0, 0], sizes = [8, 8], strides = [1, 1]} : vector<8x32xf32> to vector<8x8xf32>
    %21 = arith.truncf %20 : vector<8x8xf32> to vector<8x8xbf16>
    %cst_6 = arith.constant dense<0.000000e+00> : vector<8x8xf32>
    %22 = tpu.matmul %17, %19, %cst_6 {dimension_numbers = #tpu.dot_dimension_numbers<[1], [1], [0], [0], [0, 0, 1, 0], [], []>} : vector<8x8xbf16>, vector<8x8xbf16>, vector<8x8xf32> -> vector<8x8xf32>
    %cst_7 = arith.constant -1.000000e+09 : f32
    %23 = vector.broadcast %cst_7 : f32 to vector<8x8xf32>
    %24 = arith.select %15, %22, %23 : vector<8x8xi1>, vector<8x8xf32>
    %cst_8 = arith.constant dense<0xFF800000> : vector<8xf32>
    %25 = vector.multi_reduction <maximumf>, %24, %cst_8 [1] : vector<8x8xf32> to vector<8xf32>
    %26 = vector.shape_cast %25 : vector<8xf32> to vector<8x1xf32>
    %27 = vector.broadcast %26 : vector<8x1xf32> to vector<8x8xf32>
    %28 = arith.subf %24, %27 : vector<8x8xf32>
    %29 = math.exp %28 : vector<8x8xf32>
    %cst_9 = arith.constant dense<0.000000e+00> : vector<8xf32>
    %30 = vector.multi_reduction <add>, %29, %cst_9 [1] : vector<8x8xf32> to vector<8xf32>
    %31 = vector.shape_cast %30 : vector<8xf32> to vector<8x1xf32>
    %32 = tpu.reciprocal %31 {approx = true} : vector<8x1xf32> -> vector<8x1xf32>
    %33 = vector.broadcast %32 : vector<8x1xf32> to vector<8x8xf32>
    %34 = arith.mulf %29, %33 : vector<8x8xf32>
    %35 = arith.truncf %34 : vector<8x8xf32> to vector<8x8xbf16>
    %cst_10 = arith.constant dense<0.000000e+00> : vector<8x8xf32>
    %36 = tpu.matmul %35, %21, %cst_10 {dimension_numbers = #tpu.dot_dimension_numbers<[1], [0], [0], [1], [0, 0, 1, 1], [], []>} : vector<8x8xbf16>, vector<8x8xbf16>, vector<8x8xf32> -> vector<8x8xf32>
    %c0_11 = arith.constant 0 : index
    %c0_12 = arith.constant 0 : index
    %37 = vector.load %arg15[%c0_11, %c0_12] : memref<8x32xf32, #tpu.memory_space<vmem>>, vector<8x8xf32>
    tpu.vector_store %arg15[%c0_11, %c0_12], %36 {strides = array<i32>} : memref<8x32xf32, #tpu.memory_space<vmem>>, vector<8x8xf32>,
    %38 = vector.extract_strided_slice %10 {offsets = [0, 8], sizes = [8, 8], strides = [1, 1]} : vector<8x32xf32> to vector<8x8xf32>
    %39 = arith.truncf %38 : vector<8x8xf32> to vector<8x8xbf16>
    %40 = vector.extract_strided_slice %11 {offsets = [0, 8], sizes = [8, 8], strides = [1, 1]} : vector<8x32xf32> to vector<8x8xf32>
    %41 = arith.truncf %40 : vector<8x8xf32> to vector<8x8xbf16>
    %42 = vector.extract_strided_slice %12 {offsets = [0, 8], sizes = [8, 8], strides = [1, 1]} : vector<8x32xf32> to vector<8x8xf32>
    %43 = arith.truncf %42 : vector<8x8xf32> to vector<8x8xbf16>
    %cst_13 = arith.constant dense<0.000000e+00> : vector<8x8xf32>
    %44 = tpu.matmul %39, %41, %cst_13 {dimension_numbers = #tpu.dot_dimension_numbers<[1], [1], [0], [0], [0, 0, 1, 0], [], []>} : vector<8x8xbf16>, vector<8x8xbf16>, vector<8x8xf32> -> vector<8x8xf32>
    %cst_14 = arith.constant -1.000000e+09 : f32
    %45 = vector.broadcast %cst_14 : f32 to vector<8x8xf32>
    %46 = arith.select %15, %44, %45 : vector<8x8xi1>, vector<8x8xf32>
    %cst_15 = arith.constant dense<0xFF800000> : vector<8xf32>
    %47 = vector.multi_reduction <maximumf>, %46, %cst_15 [1] : vector<8x8xf32> to vector<8xf32>
    %48 = vector.shape_cast %47 : vector<8xf32> to vector<8x1xf32>
    %49 = vector.broadcast %48 : vector<8x1xf32> to vector<8x8xf32>
    %50 = arith.subf %46, %49 : vector<8x8xf32>
    %51 = math.exp %50 : vector<8x8xf32>
    %cst_16 = arith.constant dense<0.000000e+00> : vector<8xf32>
    %52 = vector.multi_reduction <add>, %51, %cst_16 [1] : vector<8x8xf32> to vector<8xf32>
    %53 = vector.shape_cast %52 : vector<8xf32> to vector<8x1xf32>
    %54 = tpu.reciprocal %53 {approx = true} : vector<8x1xf32> -> vector<8x1xf32>
    %55 = vector.broadcast %54 : vector<8x1xf32> to vector<8x8xf32>
    %56 = arith.mulf %51, %55 : vector<8x8xf32>
    %57 = arith.truncf %56 : vector<8x8xf32> to vector<8x8xbf16>
    %cst_17 = arith.constant dense<0.000000e+00> : vector<8x8xf32>
    %58 = tpu.matmul %57, %43, %cst_17 {dimension_numbers = #tpu.dot_dimension_numbers<[1], [0], [0], [1], [0, 0, 1, 1], [], []>} : vector<8x8xbf16>, vector<8x8xbf16>, vector<8x8xf32> -> vector<8x8xf32>
    %c0_18 = arith.constant 0 : index
    %c8 = arith.constant 8 : index
    %59 = vector.load %arg15[%c0_18, %c8] : memref<8x32xf32, #tpu.memory_space<vmem>>, vector<8x8xf32>
    tpu.vector_store %arg15[%c0_18, %c8], %58 {strides = array<i32>} : memref<8x32xf32, #tpu.memory_space<vmem>>, vector<8x8xf32>,
    %60 = vector.extract_strided_slice %10 {offsets = [0, 16], sizes = [8, 8], strides = [1, 1]} : vector<8x32xf32> to vector<8x8xf32>
    %61 = arith.truncf %60 : vector<8x8xf32> to vector<8x8xbf16>
    %62 = vector.extract_strided_slice %11 {offsets = [0, 16], sizes = [8, 8], strides = [1, 1]} : vector<8x32xf32> to vector<8x8xf32>
    %63 = arith.truncf %62 : vector<8x8xf32> to vector<8x8xbf16>
    %64 = vector.extract_strided_slice %12 {offsets = [0, 16], sizes = [8, 8], strides = [1, 1]} : vector<8x32xf32> to vector<8x8xf32>
    %65 = arith.truncf %64 : vector<8x8xf32> to vector<8x8xbf16>
    %cst_19 = arith.constant dense<0.000000e+00> : vector<8x8xf32>
    %66 = tpu.matmul %61, %63, %cst_19 {dimension_numbers = #tpu.dot_dimension_numbers<[1], [1], [0], [0], [0, 0, 1, 0], [], []>} : vector<8x8xbf16>, vector<8x8xbf16>, vector<8x8xf32> -> vector<8x8xf32>
    %cst_20 = arith.constant -1.000000e+09 : f32
    %67 = vector.broadcast %cst_20 : f32 to vector<8x8xf32>
    %68 = arith.select %15, %66, %67 : vector<8x8xi1>, vector<8x8xf32>
    %cst_21 = arith.constant dense<0xFF800000> : vector<8xf32>
    %69 = vector.multi_reduction <maximumf>, %68, %cst_21 [1] : vector<8x8xf32> to vector<8xf32>
    %70 = vector.shape_cast %69 : vector<8xf32> to vector<8x1xf32>
    %71 = vector.broadcast %70 : vector<8x1xf32> to vector<8x8xf32>
    %72 = arith.subf %68, %71 : vector<8x8xf32>
    %73 = math.exp %72 : vector<8x8xf32>
    %cst_22 = arith.constant dense<0.000000e+00> : vector<8xf32>
    %74 = vector.multi_reduction <add>, %73, %cst_22 [1] : vector<8x8xf32> to vector<8xf32>
    %75 = vector.shape_cast %74 : vector<8xf32> to vector<8x1xf32>
    %76 = tpu.reciprocal %75 {approx = true} : vector<8x1xf32> -> vector<8x1xf32>
    %77 = vector.broadcast %76 : vector<8x1xf32> to vector<8x8xf32>
    %78 = arith.mulf %73, %77 : vector<8x8xf32>
    %79 = arith.truncf %78 : vector<8x8xf32> to vector<8x8xbf16>
    %cst_23 = arith.constant dense<0.000000e+00> : vector<8x8xf32>
    %80 = tpu.matmul %79, %65, %cst_23 {dimension_numbers = #tpu.dot_dimension_numbers<[1], [0], [0], [1], [0, 0, 1, 1], [], []>} : vector<8x8xbf16>, vector<8x8xbf16>, vector<8x8xf32> -> vector<8x8xf32>
    %c0_24 = arith.constant 0 : index
    %c16 = arith.constant 16 : index
    %81 = vector.load %arg15[%c0_24, %c16] : memref<8x32xf32, #tpu.memory_space<vmem>>, vector<8x8xf32>
    tpu.vector_store %arg15[%c0_24, %c16], %80 {strides = array<i32>} : memref<8x32xf32, #tpu.memory_space<vmem>>, vector<8x8xf32>,
    %82 = vector.extract_strided_slice %10 {offsets = [0, 24], sizes = [8, 8], strides = [1, 1]} : vector<8x32xf32> to vector<8x8xf32>
    %83 = arith.truncf %82 : vector<8x8xf32> to vector<8x8xbf16>
    %84 = vector.extract_strided_slice %11 {offsets = [0, 24], sizes = [8, 8], strides = [1, 1]} : vector<8x32xf32> to vector<8x8xf32>
    %85 = arith.truncf %84 : vector<8x8xf32> to vector<8x8xbf16>
    %86 = vector.extract_strided_slice %12 {offsets = [0, 24], sizes = [8, 8], strides = [1, 1]} : vector<8x32xf32> to vector<8x8xf32>
    %87 = arith.truncf %86 : vector<8x8xf32> to vector<8x8xbf16>
    %cst_25 = arith.constant dense<0.000000e+00> : vector<8x8xf32>
    %88 = tpu.matmul %83, %85, %cst_25 {dimension_numbers = #tpu.dot_dimension_numbers<[1], [1], [0], [0], [0, 0, 1, 0], [], []>} : vector<8x8xbf16>, vector<8x8xbf16>, vector<8x8xf32> -> vector<8x8xf32>
    %cst_26 = arith.constant -1.000000e+09 : f32
    %89 = vector.broadcast %cst_26 : f32 to vector<8x8xf32>
    %90 = arith.select %15, %88, %89 : vector<8x8xi1>, vector<8x8xf32>
    %cst_27 = arith.constant dense<0xFF800000> : vector<8xf32>
    %91 = vector.multi_reduction <maximumf>, %90, %cst_27 [1] : vector<8x8xf32> to vector<8xf32>
    %92 = vector.shape_cast %91 : vector<8xf32> to vector<8x1xf32>
    %93 = vector.broadcast %92 : vector<8x1xf32> to vector<8x8xf32>
    %94 = arith.subf %90, %93 : vector<8x8xf32>
    %95 = math.exp %94 : vector<8x8xf32>
    %cst_28 = arith.constant dense<0.000000e+00> : vector<8xf32>
    %96 = vector.multi_reduction <add>, %95, %cst_28 [1] : vector<8x8xf32> to vector<8xf32>
    %97 = vector.shape_cast %96 : vector<8xf32> to vector<8x1xf32>
    %98 = tpu.reciprocal %97 {approx = true} : vector<8x1xf32> -> vector<8x1xf32>
    %99 = vector.broadcast %98 : vector<8x1xf32> to vector<8x8xf32>
    %100 = arith.mulf %95, %99 : vector<8x8xf32>
    %101 = arith.truncf %100 : vector<8x8xf32> to vector<8x8xbf16>
    %cst_29 = arith.constant dense<0.000000e+00> : vector<8x8xf32>
    %102 = tpu.matmul %101, %87, %cst_29 {dimension_numbers = #tpu.dot_dimension_numbers<[1], [0], [0], [1], [0, 0, 1, 1], [], []>} : vector<8x8xbf16>, vector<8x8xbf16>, vector<8x8xf32> -> vector<8x8xf32>
    %c0_30 = arith.constant 0 : index
    %c24 = arith.constant 24 : index
    %103 = vector.load %arg15[%c0_30, %c24] : memref<8x32xf32, #tpu.memory_space<vmem>>, vector<8x8xf32>
    tpu.vector_store %arg15[%c0_30, %c24], %102 {strides = array<i32>} : memref<8x32xf32, #tpu.memory_space<vmem>>, vector<8x8xf32>,
    %c0_31 = arith.constant 0 : index
    %c0_32 = arith.constant 0 : index
    %104 = vector.load %arg15[%c0_31, %c0_32] : memref<8x32xf32, #tpu.memory_space<vmem>>, vector<8x32xf32>
    %105 = arith.truncf %104 : vector<8x32xf32> to vector<8x32xbf16>
    %c0_33 = arith.constant 0 : index
    %c0_34 = arith.constant 0 : index
    %106 = vector.load %arg4[%c0_33, %c0_34] : memref<32x32xbf16, #tpu.memory_space<vmem>>, vector<32x32xbf16>
    %cst_35 = arith.constant dense<0.000000e+00> : vector<8x32xf32>
    %107 = tpu.matmul %105, %106, %cst_35 {dimension_numbers = #tpu.dot_dimension_numbers<[1], [0], [0], [1], [0, 0, 1, 1], [], []>} : vector<8x32xbf16>, vector<32x32xbf16>, vector<8x32xf32> -> vector<8x32xf32>
    %c0_36 = arith.constant 0 : index
    %c0_37 = arith.constant 0 : index
    %108 = vector.load %arg5[%c0_36, %c0_37] : memref<1x32xf32, #tpu.memory_space<vmem>>, vector<1x32xf32>
    %109 = vector.shape_cast %108 : vector<1x32xf32> to vector<32xf32>
    %110 = vector.shape_cast %109 : vector<32xf32> to vector<1x32xf32>
    %111 = vector.broadcast %110 : vector<1x32xf32> to vector<8x32xf32>
    %112 = arith.addf %107, %111 : vector<8x32xf32>
    %113 = arith.addf %1, %112 : vector<8x32xf32>
    %c0_38 = arith.constant 0 : index
    %c0_39 = arith.constant 0 : index
    %114 = vector.load %arg6[%c0_38, %c0_39] : memref<1x32xf32, #tpu.memory_space<vmem>>, vector<1x32xf32>
    %115 = vector.shape_cast %114 : vector<1x32xf32> to vector<32xf32>
    %c0_40 = arith.constant 0 : index
    %c0_41 = arith.constant 0 : index
    %116 = vector.load %arg7[%c0_40, %c0_41] : memref<1x32xf32, #tpu.memory_space<vmem>>, vector<1x32xf32>
    %117 = vector.shape_cast %116 : vector<1x32xf32> to vector<32xf32>
    %cst_42 = arith.constant dense<0.000000e+00> : vector<8xf32>
    %118 = vector.multi_reduction <add>, %113, %cst_42 [1] : vector<8x32xf32> to vector<8xf32>
    %119 = vector.shape_cast %118 : vector<8xf32> to vector<8x1xf32>
    %cst_43 = arith.constant 3.200000e+01 : f32
    %120 = vector.broadcast %cst_43 : f32 to vector<8x1xf32>
    %121 = arith.divf %119, %120 : vector<8x1xf32>
    %122 = vector.broadcast %121 : vector<8x1xf32> to vector<8x32xf32>
    %123 = arith.subf %113, %122 : vector<8x32xf32>
    %124 = arith.mulf %123, %123 : vector<8x32xf32>
    %cst_44 = arith.constant dense<0.000000e+00> : vector<8xf32>
    %125 = vector.multi_reduction <add>, %124, %cst_44 [1] : vector<8x32xf32> to vector<8xf32>
    %126 = vector.shape_cast %125 : vector<8xf32> to vector<8x1xf32>
    %cst_45 = arith.constant 3.200000e+01 : f32
    %127 = vector.broadcast %cst_45 : f32 to vector<8x1xf32>
    %128 = arith.divf %126, %127 : vector<8x1xf32>
    %129 = vector.broadcast %121 : vector<8x1xf32> to vector<8x32xf32>
    %130 = arith.subf %113, %129 : vector<8x32xf32>
    %cst_46 = arith.constant 9.99999974E-6 : f32
    %131 = vector.broadcast %cst_46 : f32 to vector<8x1xf32>
    %132 = arith.addf %128, %131 : vector<8x1xf32>
    %133 = math.rsqrt %132 : vector<8x1xf32>
    %134 = vector.broadcast %133 : vector<8x1xf32> to vector<8x32xf32>
    %135 = arith.mulf %130, %134 : vector<8x32xf32>
    %136 = vector.shape_cast %115 : vector<32xf32> to vector<1x32xf32>
    %137 = vector.broadcast %136 : vector<1x32xf32> to vector<8x32xf32>
    %138 = arith.mulf %135, %137 : vector<8x32xf32>
    %139 = vector.shape_cast %117 : vector<32xf32> to vector<1x32xf32>
    %140 = vector.broadcast %139 : vector<1x32xf32> to vector<8x32xf32>
    %141 = arith.addf %138, %140 : vector<8x32xf32>
    %142 = arith.truncf %141 : vector<8x32xf32> to vector<8x32xbf16>
    %c0_47 = arith.constant 0 : index
    %c0_48 = arith.constant 0 : index
    %143 = vector.load %arg8[%c0_47, %c0_48] : memref<32x128xbf16, #tpu.memory_space<vmem>>, vector<32x128xbf16>
    %cst_49 = arith.constant dense<0.000000e+00> : vector<8x128xf32>
    %144 = tpu.matmul %142, %143, %cst_49 {dimension_numbers = #tpu.dot_dimension_numbers<[1], [0], [0], [1], [0, 0, 1, 1], [], []>} : vector<8x32xbf16>, vector<32x128xbf16>, vector<8x128xf32> -> vector<8x128xf32>
    %c0_50 = arith.constant 0 : index
    %c0_51 = arith.constant 0 : index
    %145 = vector.load %arg9[%c0_50, %c0_51] : memref<1x128xf32, #tpu.memory_space<vmem>>, vector<1x128xf32>
    %146 = vector.shape_cast %145 : vector<1x128xf32> to vector<128xf32>
    %147 = vector.shape_cast %146 : vector<128xf32> to vector<1x128xf32>
    %148 = vector.broadcast %147 : vector<1x128xf32> to vector<8x128xf32>
    %149 = arith.addf %144, %148 : vector<8x128xf32>
    %cst_52 = arith.constant 5.000000e-01 : f32
    %150 = vector.broadcast %cst_52 : f32 to vector<8x128xf32>
    %151 = arith.mulf %150, %149 : vector<8x128xf32>
    %cst_53 = arith.constant 4.471500e-02 : f32
    %152 = vector.broadcast %cst_53 : f32 to vector<8x128xf32>
    %153 = arith.mulf %152, %149 : vector<8x128xf32>
    %154 = arith.mulf %153, %149 : vector<8x128xf32>
    %155 = arith.mulf %154, %149 : vector<8x128xf32>
    %156 = arith.addf %149, %155 : vector<8x128xf32>
    %cst_54 = arith.constant 0.797884583 : f32
    %157 = vector.broadcast %cst_54 : f32 to vector<8x128xf32>
    %158 = arith.mulf %157, %156 : vector<8x128xf32>
    %159 = math.tanh %158 : vector<8x128xf32>
    %cst_55 = arith.constant 1.000000e+00 : f32
    %160 = vector.broadcast %cst_55 : f32 to vector<8x128xf32>
    %161 = arith.addf %160, %159 : vector<8x128xf32>
    %162 = arith.mulf %151, %161 : vector<8x128xf32>
    %163 = arith.truncf %162 : vector<8x128xf32> to vector<8x128xbf16>
    %c0_56 = arith.constant 0 : index
    %c0_57 = arith.constant 0 : index
    %164 = vector.load %arg10[%c0_56, %c0_57] : memref<128x32xbf16, #tpu.memory_space<vmem>>, vector<128x32xbf16>
    %cst_58 = arith.constant dense<0.000000e+00> : vector<8x32xf32>
    %165 = tpu.matmul %163, %164, %cst_58 {dimension_numbers = #tpu.dot_dimension_numbers<[1], [0], [0], [1], [0, 0, 1, 1], [], []>} : vector<8x128xbf16>, vector<128x32xbf16>, vector<8x32xf32> -> vector<8x32xf32>
    %c0_59 = arith.constant 0 : index
    %c0_60 = arith.constant 0 : index
    %166 = vector.load %arg11[%c0_59, %c0_60] : memref<1x32xf32, #tpu.memory_space<vmem>>, vector<1x32xf32>
    %167 = vector.shape_cast %166 : vector<1x32xf32> to vector<32xf32>
    %168 = vector.shape_cast %167 : vector<32xf32> to vector<1x32xf32>
    %169 = vector.broadcast %168 : vector<1x32xf32> to vector<8x32xf32>
    %170 = arith.addf %165, %169 : vector<8x32xf32>
    %171 = arith.addf %141, %170 : vector<8x32xf32>
    %c0_61 = arith.constant 0 : index
    %c0_62 = arith.constant 0 : index
    %172 = vector.load %arg12[%c0_61, %c0_62] : memref<1x32xf32, #tpu.memory_space<vmem>>, vector<1x32xf32>
    %173 = vector.shape_cast %172 : vector<1x32xf32> to vector<32xf32>
    %c0_63 = arith.constant 0 : index
    %c0_64 = arith.constant 0 : index
    %174 = vector.load %arg13[%c0_63, %c0_64] : memref<1x32xf32, #tpu.memory_space<vmem>>, vector<1x32xf32>
    %175 = vector.shape_cast %174 : vector<1x32xf32> to vector<32xf32>
    %cst_65 = arith.constant dense<0.000000e+00> : vector<8xf32>
    %176 = vector.multi_reduction <add>, %171, %cst_65 [1] : vector<8x32xf32> to vector<8xf32>
    %177 = vector.shape_cast %176 : vector<8xf32> to vector<8x1xf32>
    %cst_66 = arith.constant 3.200000e+01 : f32
    %178 = vector.broadcast %cst_66 : f32 to vector<8x1xf32>
    %179 = arith.divf %177, %178 : vector<8x1xf32>
    %180 = vector.broadcast %179 : vector<8x1xf32> to vector<8x32xf32>
    %181 = arith.subf %171, %180 : vector<8x32xf32>
    %182 = arith.mulf %181, %181 : vector<8x32xf32>
    %cst_67 = arith.constant dense<0.000000e+00> : vector<8xf32>
    %183 = vector.multi_reduction <add>, %182, %cst_67 [1] : vector<8x32xf32> to vector<8xf32>
    %184 = vector.shape_cast %183 : vector<8xf32> to vector<8x1xf32>
    %cst_68 = arith.constant 3.200000e+01 : f32
    %185 = vector.broadcast %cst_68 : f32 to vector<8x1xf32>
    %186 = arith.divf %184, %185 : vector<8x1xf32>
    %187 = vector.broadcast %179 : vector<8x1xf32> to vector<8x32xf32>
    %188 = arith.subf %171, %187 : vector<8x32xf32>
    %cst_69 = arith.constant 9.99999974E-6 : f32
    %189 = vector.broadcast %cst_69 : f32 to vector<8x1xf32>
    %190 = arith.addf %186, %189 : vector<8x1xf32>
    %191 = math.rsqrt %190 : vector<8x1xf32>
    %192 = vector.broadcast %191 : vector<8x1xf32> to vector<8x32xf32>
    %193 = arith.mulf %188, %192 : vector<8x32xf32>
    %194 = vector.shape_cast %173 : vector<32xf32> to vector<1x32xf32>
    %195 = vector.broadcast %194 : vector<1x32xf32> to vector<8x32xf32>
    %196 = arith.mulf %193, %195 : vector<8x32xf32>
    %197 = vector.shape_cast %175 : vector<32xf32> to vector<1x32xf32>
    %198 = vector.broadcast %197 : vector<1x32xf32> to vector<8x32xf32>
    %199 = arith.addf %196, %198 : vector<8x32xf32>
    %c0_70 = arith.constant 0 : index
    %c0_71 = arith.constant 0 : index
    %c0_72 = arith.constant 0 : index
    %200 = vector.load %arg14[%c0_70, %c0_71, %c0_72] : memref<1x8x32xf32, #tpu.memory_space<vmem>>, vector<1x8x32xf32>
    %201 = vector.shape_cast %200 : vector<1x8x32xf32> to vector<8x32xf32>
    %202 = vector.shape_cast %199 : vector<8x32xf32> to vector<1x8x32xf32>
    tpu.vector_store %arg14[%c0_70, %c0_71, %c0_72], %202 {strides = array<i32>} : memref<1x8x32xf32, #tpu.memory_space<vmem>>, vector<1x8x32xf32>,
    return
  }
  func.func @transform_0(%arg0: i32) -> (i32, i32, i32) {
    %c0_i32 = arith.constant 0 : i32
    %c0_i32_0 = arith.constant 0 : i32
    %c0_i32_1 = arith.constant 0 : i32
    return %arg0, %c0_i32, %c0_i32_0 : i32, i32, i32
  }
  func.func @transform_1(%arg0: i32) -> (i32, i32) {
    %c0_i32 = arith.constant 0 : i32
    %c0_i32_0 = arith.constant 0 : i32
    %c0_i32_1 = arith.constant 0 : i32
    return %c0_i32, %c0_i32_0 : i32, i32
  }
  func.func @transform_2(%arg0: i32) -> (i32, i32) {
    %c0_i32 = arith.constant 0 : i32
    %c0_i32_0 = arith.constant 0 : i32
    %c0_i32_1 = arith.constant 0 : i32
    return %c0_i32, %c0_i32_0 : i32, i32
  }
  func.func @transform_3(%arg0: i32) -> (i32, i32) {
    %c0_i32 = arith.constant 0 : i32
    %c0_i32_0 = arith.constant 0 : i32
    %c0_i32_1 = arith.constant 0 : i32
    return %c0_i32, %c0_i32_0 : i32, i32
  }
  func.func @transform_4(%arg0: i32) -> (i32, i32) {
    %c0_i32 = arith.constant 0 : i32
    %c0_i32_0 = arith.constant 0 : i32
    %c0_i32_1 = arith.constant 0 : i32
    return %c0_i32, %c0_i32_0 : i32, i32
  }
  func.func @transform_5(%arg0: i32) -> (i32, i32) {
    %c0_i32 = arith.constant 0 : i32
    %c0_i32_0 = arith.constant 0 : i32
    %c0_i32_1 = arith.constant 0 : i32
    return %c0_i32, %c0_i32_0 : i32, i32
  }
  func.func @transform_6(%arg0: i32) -> (i32, i32) {
    %c0_i32 = arith.constant 0 : i32
    %c0_i32_0 = arith.constant 0 : i32
    %c0_i32_1 = arith.constant 0 : i32
    return %c0_i32, %c0_i32_0 : i32, i32
  }
  func.func @transform_7(%arg0: i32) -> (i32, i32) {
    %c0_i32 = arith.constant 0 : i32
    %c0_i32_0 = arith.constant 0 : i32
    %c0_i32_1 = arith.constant 0 : i32
    return %c0_i32, %c0_i32_0 : i32, i32
  }
  func.func @transform_8(%arg0: i32) -> (i32, i32) {
    %c0_i32 = arith.constant 0 : i32
    %c0_i32_0 = arith.constant 0 : i32
    %c0_i32_1 = arith.constant 0 : i32
    return %c0_i32, %c0_i32_0 : i32, i32
  }
  func.func @transform_9(%arg0: i32) -> (i32, i32) {
    %c0_i32 = arith.constant 0 : i32
    %c0_i32_0 = arith.constant 0 : i32
    %c0_i32_1 = arith.constant 0 : i32
    return %c0_i32, %c0_i32_0 : i32, i32
  }
  func.func @transform_10(%arg0: i32) -> (i32, i32) {
    %c0_i32 = arith.constant 0 : i32
    %c0_i32_0 = arith.constant 0 : i32
    %c0_i32_1 = arith.constant 0 : i32
    return %c0_i32, %c0_i32_0 : i32, i32
  }
  func.func @transform_11(%arg0: i32) -> (i32, i32) {
    %c0_i32 = arith.constant 0 : i32
    %c0_i32_0 = arith.constant 0 : i32
    %c0_i32_1 = arith.constant 0 : i32
    return %c0_i32, %c0_i32_0 : i32, i32
  }
  func.func @transform_12(%arg0: i32) -> (i32, i32) {
    %c0_i32 = arith.constant 0 : i32
    %c0_i32_0 = arith.constant 0 : i32
    %c0_i32_1 = arith.constant 0 : i32
    return %c0_i32, %c0_i32_0 : i32, i32
  }
  func.func @transform_13(%arg0: i32) -> (i32, i32, i32) {
    %c0_i32 = arith.constant 0 : i32
    %c0_i32_0 = arith.constant 0 : i32
    %c0_i32_1 = arith.constant 0 : i32
    return %arg0, %c0_i32, %c0_i32_0 : i32, i32, i32
  }
}

</mosaic_0001>

<bundles_post_ra>
// kernel: tpu_custom_call.1
= control target key start
LH: loop header
LB: loop body
LE: loop exit
PB: predicated region body
PF: predicated region fallthrough
CT: control target
= control target key end

     0   :  { %s1584_s0 = inlined_call_operand.vmem [shape: f32[2,8,32], index: 0, kind: input, shape index: {}]   ;;  %s1585_s1 = inlined_call_operand.vmem [shape: bf16[32,96], index: 1, kind: input, shape index: {}]   ;;  %s1586_s2 = inlined_call_operand.vmem [shape: f32[1,96], index: 2, kind: input, shape index: {}]   ;;  %s1587_s3 = inlined_call_operand.vmem [shape: bf16[32,32], index: 3, kind: input, shape index: {}]   ;;  %s1588_s4 = inlined_call_operand.vmem [shape: f32[1,32], index: 4, kind: input, shape index: {}]   ;;  %s1589_s5 = inlined_call_operand.vmem [shape: f32[1,32], index: 5, kind: input, shape index: {}]   ;;  %s1590_s6 = inlined_call_operand.vmem [shape: f32[1,32], index: 6, kind: input, shape index: {}]   ;;  %s1591_s7 = inlined_call_operand.vmem [shape: bf16[32,128], index: 7, kind: input, shape index: {}]   ;;  %s1592_s8 = inlined_call_operand.vmem [shape: f32[1,128], index: 8, kind: input, shape index: {}]   ;;  %s1593_s9 = inlined_call_operand.vmem [shape: bf16[128,32], index: 9, kind: input, shape index: {}]   ;;  %s1594_s10 = inlined_call_operand.vmem [shape: f32[1,32], index: 10, kind: input, shape index: {}]   ;;  %s1595_s11 = inlined_call_operand.vmem [shape: f32[1,32], index: 11, kind: input, shape index: {}]   ;;  %s1596_s12 = inlined_call_operand.vmem [shape: f32[1,32], index: 12, kind: input, shape index: {}]   ;;  %s1597_s13 = inlined_call_operand.hbm [shape: f32[2,8,32], index: 13, kind: output, shape index: {}]  }
   0x1   :  { %1598 = sst [smem:[#allocation7_spill]] %s1584_s0 }
   0x2   :  { %1599 = sst [smem:[#allocation8_spill]] %s1585_s1 }
   0x3   :  { %1600 = sst [smem:[#allocation9_spill]] %s1586_s2 }
   0x4   :  { %18 = vsyncpa [#allocation4], 0 }
   0x5   :  { %20 = vsyncpa [#allocation4 + $0x1], 0  ;;  %s1371_s25 = smov 0   ;;  %s1373_s26 = smov 0  }
   0x6   :  { %s1375_s27 = smov 0   ;;  %s1377_s28 = smov 0  }
   0x7 LB: > { %s1392_s29 = sadd.s32 4294967295, %s1284_s28   ;;  %s1045_s30 = sadd.s32 4294967294, %s1284_s28   ;;  %s1284_s28 = sphi %s1377_s28, %s1611_s28   ;;  %s1280_s27 = sphi %s1375_s27, %s1610_s27   ;;  %s1276_s26 = sphi %s1373_s26, %s1609_s26   ;;  %s1272_s25 = sphi %s1371_s25, %s1608_s25  }
   0x8   : > { %s1396_s14 = sadd.s32 1, %s1284_s28   ;;  %s311_s15 = sadd.s32 1, %s1280_s27 }
   0x9   : > { %s308_s16 = ssub.s32 %s1284_s28, %s1396_s14  ;;  %p321_p0 = scmp.ne.s32.totalorder %s1280_s27, %s1276_s26 }
   0xa   : > { %p309_p1 = scmp.eq.s32.totalorder %s308_s16, 0  ;;  %p322_p2 = scmp.eq.s32.totalorder %s1392_s29, 1 }
   0xb   : > { %p327_p3 = scmp.ne.s32.totalorder %s1276_s26, %s1272_s25  ;;  %p328_p4 = scmp.eq.s32.totalorder %s1045_s30, 1 }
   0xc   : > { %s1407_s17 = scalar_select %p309_p1, %s1280_s27, %s311_s15  }
   0xd   : > { %p1409_p5 = por %p322_p2, %p321_p0  ;;  %p1413_p6 = por %p328_p4, %p327_p3 }
   0xe   : > { %1601 = sst [smem:[#allocation6_spill]] %s1407_s17  ;;  %p1048_p7 = scmp.ge.s32.totalorder %s1284_s28, 1 }
   0xf   : > { %p389_p8 = scmp.lt.s32.totalorder %s1284_s28, 3 }
  0x11   : > { %p390_p9 = pnand %p1048_p7, %p389_p8 }
  0x12   : > { %s1604_s1 = sld [smem:[#allocation8_spill]] (!%p390_p9)  ;;  %p432_p10 = scmp.lt.s32.totalorder (!%p390_p9), %s1392_s29, 1 }
  0x13   : > { %393 = sbr.rel (%p390_p9) target bundleno = 2321 (0x911), region = 72  ;;  %s1605_s0 = sld [smem:[#allocation7_spill]] (!%p390_p9) }
  0x14   : > { %s1606_s2 = sld [smem:[#allocation9_spill]] (!%p390_p9)  ;;  %s1286_s22 = smov (!%p390_p9), 88  }
  0x15   : > { %s1287_s23 = smov (!%p390_p9), 96   ;;  %s1291_s15 = smov (!%p390_p9), 80  }
  0x16   : > { %s1292_s16 = smov (!%p390_p9), 64   ;;  %s1293_s20 = smov (!%p390_p9), 112  }
  0x17   : > { %s1294_s21 = smov (!%p390_p9), 56  }
  0x18   : > { %v1123_v0 = vld [vmem:[%s1604_s1 + $0x8] sm:$0xff]  ;;  %v1122_v1 = vld [vmem:[%s1604_s1] sm:$0xff]  ;;  %s433_s24 = scalar_select %p432_p10, %s1392_s29, 1  ;;  %vm459_vm0 = vcmask 261120   ;;  %vm485_vm1 = vcmask 64512   ;;  %v476_v18 = vlaneseq  ;;  %vm523_vm3 = vcmask 1043456  }
  0x19   : > { %469 = vmatpush.bf16.msra.mxu0 %v1123_v0  ;;  %vm602_vm4 = vcmask 130112   ;;  %vm665_vm5 = vcmask 195712   ;;  %vm728_vm6 = vcmask 261312  }
  0x1a   : > { %s1050_s30 = sshll.u32 %s433_s24, 3  ;;  %v1190_v4 = vld [vmem:[%s1606_s2] ss:$0 sm:$0xff]  ;;  %s1289_s24 = smov 72   ;;  %v477_v19 = vshrl.u32 %v476_v18, 7  ;;  %v479_v20 = vand.u32 127, %v476_v18 }
  0x1b   : > { %s435_s17 = scalar_lea.vmem %s1605_s0, %s1050_s30  ;;  %s1290_s30 = smov 104  }
  0x1c   : > { %v1430_v2 = vld [vmem:[%s435_s17] sm:$0xff]  ;;  %s1288_s17 = smov 120   ;;  %vm480_vm2 = vcmp.ge.s32.totalorder %v477_v19, %v479_v20 }
  0x1d   : > { %470 = vmatpush.bf16.msra.mxu0 %v1122_v1  ;;  %v438_v3 = vpack.c.bf16 %v1430_v2, %v1430_v2 }
  0x20   : > { %1059 = vmatmul.msk.bf16.vlgmr.msra.gmra.mxu0 %vm459_vm0, %v438_v3 }
  0x9d   : > { %v472_v5 = vpop.f32.mrf.mxu0 }
  0x9e   : > { %v473_v6 = vadd.f32 %v1190_v4, %v472_v5 }
  0xa0   : > { %v1438_v7 = vpack.c.bf16 %v473_v6, %v473_v6 }
  0xa2   : > { %543 = vrot.lane.b32.xlu2 %v1438_v7, %s1286_s22  ;;  %483 = vrot.lane.b32.xlu0 %v1438_v7, %s1287_s23  ;;  %s1295_s22 = smov 48   ;;  %s1296_s23 = smov 40  }
  0xa5   : > { %v474_v8 = vpop.f32.mrf.mxu0 }
  0xaa   : > { %541 = vrot.lane.b32.xlu2 %v1438_v7, %s1288_s17  ;;  %s1297_s17 = smov 16  }
  0xb2   : > { %669 = vrot.lane.b32.xlu2 %v1438_v7, %s1289_s24  ;;  %s1298_s24 = smov 8  }
  0xba   : > { %667 = vrot.lane.b32.xlu2 %v1438_v7, %s1290_s30  ;;  %s1299_s30 = smov 24  }
  0xc2   : > { %606 = vrot.lane.b32.xlu2 %v1438_v7, %s1291_s15 }
  0xfc   : > { %v544_v9 = vpop.permute.xlu2 %543 }
  0xfd   : > { %v549_v39 = vsel %vm485_vm1, %v544_v9, 0 }
 0x104   : > { %v542_v10 = vpop.permute.xlu2 %541 }
 0x10c   : > { %v670_v11 = vpop.permute.xlu2 %669 }
 0x10d   : > { %v675_v12 = vsel %vm485_vm1, %v670_v11, 0 }
 0x10e   : > { %684 = vmatpush.bf16.xpose.msra.mxu3 %v675_v12 }
 0x114   : > { %v668_v13 = vpop.permute.xlu2 %667  ;;  %v484_v14 = vpop.permute.xlu0 %483 }
 0x115   : > { %1066 = vmatmul.msk.bf16.vlgmr.msra.gmra.mxu3 %vm485_vm1, %v668_v13  ;;  %v490_v15 = vsel %vm485_vm1, %v484_v14, 0 }
 0x116   : > { %499 = vmatpush.bf16.xpose.msra.mxu1 %v490_v15 }
 0x11c   : > { %v607_v16 = vpop.permute.xlu2 %606 }
 0x11d   : > { %1060 = vmatmul.msk.bf16.vlgmr.msra.gmra.mxu1 %vm485_vm1, %v1438_v7  ;;  %v612_v17 = vsel %vm485_vm1, %v607_v16, 0 }
 0x11e   : > { %621 = vmatpush.bf16.xpose.msrb.mxu0 %v612_v17 }
 0x198   : > { %v686_v21 = vpop.f32.mrf.mxu3 }
 0x199   : > { %v690_v32 = vsel %vm480_vm2, %v686_v21, -1e+09 }
 0x19a   : > { %v501_v22 = vpop.f32.mrf.mxu1  ;;  %v691_v33 = vsel %vm485_vm1, %v690_v32, -inf }
 0x19b   : > { %v505_v23 = vsel %vm480_vm2, %v501_v22, -1e+09 }
 0x19c   : > { %v506_v24 = vsel %vm485_vm1, %v505_v23, -inf }
 0x19d   : > { %507 = vmax.xlane.f32.xlu0 %v506_v24 }
 0x1a0   : > { %v688_v25 = vpop.f32.mrf.mxu3 }
 0x1a2   : > { %v503_v26 = vpop.f32.mrf.mxu1 }
 0x210   : > { %v508_v27 = vpop.xlane.xlu0 %507 }
 0x211   : > { %v509_v28 = vsub.f32 %v505_v23, %v508_v27 }
 0x213   : > { %v510_v29 = vmul.f32 1.442695, %v509_v28  ;;  %v1125_v28 = vld [vmem:[%s1587_s3 + $0x8] sm:$0xff] }
 0x214   : > { %761 = vmatpush.bf16.msra.mxu0 %v1125_v28 }
 0x215   : > { %1198 = vpow2.f32 %v510_v29  ;;  %v1124_v29 = vld [vmem:[%s1587_s3] sm:$0xff] }
 0x218   : > { %762 = vmatpush.bf16.msra.mxu0 %v1124_v29  ;;  %v1195_v29 = vld [vmem:[%s1594_s10] ss:$0 sm:$0xff] }
 0x21b   : > { %v1199_v30 = vpop.eup %1198 }
 0x21c   : > { %v512_v31 = vsel %vm485_vm1, %v1199_v30, 0.0 }
 0x21d   : > { %513 = vadd.xlane.f32.xlu1 %v512_v31 }
 0x236   : > { %518 = vrot.lane.b32.xlu1 %v1438_v7, %s1292_s16 }
 0x23e   : > { %604 = vrot.lane.b32.xlu1 %v1438_v7, %s1293_s20 }
 0x268   : > { %692 = vmax.xlane.f32.xlu1 %v691_v33 }
 0x290   : > { %v514_v34 = vpop.xlane.xlu1 %513 }
 0x291   : > { %1200 = vrcp.f32 %v514_v34 }
 0x297   : > { %v1201_v35 = vpop.eup %1200 }
 0x298   : > { %v516_v36 = vmul.f32 %v1201_v35, %v1199_v30  ;;  %v1191_v35 = vld [vmem:[%s1588_s4] ss:$0 sm:$0xff] }
 0x29a   : > { %v517_v40 = vpack.c.bf16 %v516_v36, %v516_v36 }
 0x2a8   : > { %v519_v37 = vpop.permute.xlu1 %518 }
 0x2a9   : > { %v525_v38 = vsel %vm523_vm3, %v519_v37, 0 }
 0x2aa   : > { %534 = vmatpush.bf16.msra.mxu2 %v525_v38 }
 0x2ad   : > { %1061 = vmatmul.msk.bf16.vlgmr.msra.gmra.mxu2 %vm485_vm1, %v517_v40 }
 0x2ae   : > { %558 = vmatpush.bf16.xpose.msrb.mxu2 %v549_v39 }
 0x2b0   : > { %v605_v41 = vpop.permute.xlu1 %604 }
 0x2b1   : > { %1064 = vmatmul.msk.bf16.vlgmr.msrb.gmra.mxu0 %vm485_vm1, %v605_v41  ;;  %v1300_v41 = vmov 32.0  }
 0x2bd   : > { %1062 = vmatmul.msk.bf16.vlgmr.msrb.gmra.mxu2 %vm485_vm1, %v542_v10 }
 0x2db   : > { %v693_v46 = vpop.xlane.xlu1 %692 }
 0x2dc   : > { %v694_v49 = vsub.f32 %v690_v32, %v693_v46 }
 0x2de   : > { %v695_v50 = vmul.f32 1.442695, %v694_v49 }
 0x2e0   : > { %1202 = vpow2.f32 %v695_v50 }
 0x2e6   : > { %v1203_v54 = vpop.eup %1202 }
 0x2e7   : > { %v697_v56 = vsel %vm485_vm1, %v1203_v54, 0.0 }
 0x32e   : > { %v623_v42 = vpop.f32.mrf.mxu0 }
 0x32f   : > { %v627_v43 = vsel %vm480_vm2, %v623_v42, -1e+09 }
 0x330   : > { %v536_v44 = vpop.f32.mrf.mxu2  ;;  %v628_v45 = vsel %vm485_vm1, %v627_v43, -inf }
 0x331   : > { %540 = vst.msk [vmem:[#allocation2] sm:$0xff] %vm485_vm1, %v536_v44  ;;  %629 = vmax.xlane.f32.xlu0 %v628_v45 }
 0x336   : > { %v625_v47 = vpop.f32.mrf.mxu0 }
 0x338   : > { %v538_v48 = vpop.f32.mrf.mxu2 }
 0x340   : > { %v560_v51 = vpop.f32.mrf.mxu2 }
 0x341   : > { %v564_v52 = vsel %vm480_vm2, %v560_v51, -1e+09 }
 0x342   : > { %v565_v53 = vsel %vm485_vm1, %v564_v52, -inf }
 0x343   : > { %566 = vmax.xlane.f32.xlu2 %v565_v53  ;;  %v1126_v53 = vld [vmem:[%s1591_s7] sm:$0xff] }
 0x345   : > { %577 = vrot.lane.b32.xlu0 %v1438_v7, %s1294_s21 }
 0x348   : > { %v562_v55 = vpop.f32.mrf.mxu2 }
 0x34b   : > { %698 = vadd.xlane.f32.xlu2 %v697_v56 }
 0x363   : > { %640 = vrot.lane.b32.xlu2 %v1438_v7, %s1295_s22 }
 0x3a4   : > { %v630_v57 = vpop.xlane.xlu0 %629 }
 0x3a5   : > { %v631_v58 = vsub.f32 %v627_v43, %v630_v57  ;;  %v1134_v57 = vld [vmem:[%s1593_s9 + $0x30] sm:$0xff] }
 0x3a7   : > { %v632_v59 = vmul.f32 1.442695, %v631_v58 }
 0x3a9   : > { %1204 = vpow2.f32 %v632_v59 }
 0x3af   : > { %v1205_v60 = vpop.eup %1204 }
 0x3b0   : > { %v634_v61 = vsel %vm485_vm1, %v1205_v60, 0.0 }
 0x3b1   : > { %635 = vadd.xlane.f32.xlu1 %v634_v61 }
 0x3b6   : > { %v567_v62 = vpop.xlane.xlu2 %566 }
 0x3b7   : > { %v568_v63 = vsub.f32 %v564_v52, %v567_v62  ;;  %v578_v0 = vpop.permute.xlu0 %577  ;;  %v1127_v52 = vld [vmem:[%s1591_s7 + $0x8] sm:$0xff] }
 0x3b8   : > { %v583_v1 = vsel %vm523_vm3, %v578_v0, 0 }
 0x3b9   : > { %v569_v3 = vmul.f32 1.442695, %v568_v63  ;;  %592 = vmatpush.bf16.msra.mxu2 %v583_v1  ;;  %v1192_v1 = vld [vmem:[%s1589_s5] ss:$0 sm:$0xff] }
 0x3bb   : > { %1206 = vpow2.f32 %v569_v3 }
 0x3be   : > { %v699_v4 = vpop.xlane.xlu2 %698 }
 0x3c1   : > { %v1207_v5 = vpop.eup %1206 }
 0x3c2   : > { %v571_v6 = vsel %vm485_vm1, %v1207_v5, 0.0 }
 0x3c3   : > { %572 = vadd.xlane.f32.xlu0 %v571_v6 }
 0x3c6   : > { %v641_v8 = vpop.permute.xlu2 %640 }
 0x3c7   : > { %v646_v9 = vsel %vm523_vm3, %v641_v8, 0 }
 0x3c8   : > { %655 = vmatpush.bf16.msrb.mxu1 %v646_v9 }
 0x3cc   : > { %838 = vmatpush.bf16.msra.mxu1 %v1127_v52 }
 0x3d0   : > { %839 = vmatpush.bf16.msra.mxu1 %v1126_v53 }
 0x3d7   : > { %703 = vrot.lane.b32.xlu0 %v1438_v7, %s1296_s23  ;;  %s429_s23 = sand.u32 1, %s1276_s26  }
 0x424   : > { %v636_v10 = vpop.xlane.xlu1 %635 }
 0x425   : > { %1208 = vrcp.f32 %v636_v10  ;;  %v1133_v10 = vld [vmem:[%s1593_s9 + $0x28] sm:$0xff] }
 0x42b   : > { %v1209_v11 = vpop.eup %1208 }
 0x42c   : > { %v638_v12 = vmul.f32 %v1209_v11, %v1205_v60  ;;  %v1132_v11 = vld [vmem:[%s1593_s9 + $0x20] sm:$0xff] }
 0x42e   : > { %v639_v13 = vpack.c.bf16 %v638_v12, %v638_v12  ;;  %v1131_v12 = vld [vmem:[%s1593_s9 + $0x18] sm:$0xff] }
 0x430   : > { %1065 = vmatmul.msk.bf16.vlgmr.msrb.gmra.mxu1 %vm485_vm1, %v639_v13  ;;  %v1130_v13 = vld [vmem:[%s1593_s9 + $0x10] sm:$0xff] }
 0x436   : > { %v573_v14 = vpop.xlane.xlu0 %572 }
 0x437   : > { %1210 = vrcp.f32 %v573_v14  ;;  %v1129_v14 = vld [vmem:[%s1593_s9 + $0x8] sm:$0xff] }
 0x438   : > { %1212 = vrcp.f32 %v699_v4  ;;  %v1193_v4 = vld [vmem:[%s1590_s6] ss:$0 sm:$0xff] }
 0x439   : > { %1214 = vrcp.f32 %v1300_v41 }
 0x43d   : > { %v1211_v15 = vpop.eup %1210 }
 0x43e   : > { %v575_v16 = vmul.f32 %v1211_v15, %v1207_v5  ;;  %v1213_v18 = vpop.eup %1212  ;;  %v1128_v15 = vld [vmem:[%s1593_s9] sm:$0xff] }
 0x43f   : > { %v701_v7 = vmul.f32 %v1213_v18, %v1203_v54  ;;  %v1215_v42 = vpop.eup %1214  ;;  %v1135_v54 = vld [vmem:[%s1593_s9 + $0x38] sm:$0xff] }
 0x440   : > { %v576_v17 = vpack.c.bf16 %v575_v16, %v575_v16  ;;  %v775_v43 = vmul.f32 32.0, %v1215_v42  ;;  %vm779_vm7 = vweird.f32 %v1215_v42  ;;  %923 = vmatpush.bf16.msrb.mxu3 %v1135_v54  ;;  %v1194_v16 = vld [vmem:[%s1592_s8] ss:$0 sm:$0xff] }
 0x441   : > { %v702_v21 = vpack.c.bf16 %v701_v7, %v701_v7 }
 0x442   : > { %1063 = vmatmul.msk.bf16.vlgmr.msra.gmra.mxu2 %vm485_vm1, %v576_v17  ;;  %v776_v44 = vsub.f32 1.0, %v775_v43 }
 0x444   : > { %v777_v45 = vmul.f32 %v1215_v42, %v776_v44  ;;  %924 = vmatpush.bf16.msrb.mxu3 %v1134_v57 }
 0x446   : > { %v778_v46 = vadd.f32 %v1215_v42, %v777_v45 }
 0x448   : > { %v1493_v47 = vsel %vm779_vm7, %v1215_v42, %v778_v46  ;;  %925 = vmatpush.bf16.msrb.mxu3 %v1133_v10 }
 0x449   : > { %v704_v19 = vpop.permute.xlu0 %703 }
 0x44a   : > { %v709_v20 = vsel %vm523_vm3, %v704_v19, 0 }
 0x44b   : > { %718 = vmatpush.bf16.msrb.mxu2 %v709_v20 }
 0x44c   : > { %926 = vmatpush.bf16.msrb.mxu3 %v1132_v11 }
 0x450   : > { %927 = vmatpush.bf16.msrb.mxu3 %v1131_v12 }
 0x452   : > { %1067 = vmatmul.msk.bf16.vlgmr.msrb.gmra.mxu2 %vm485_vm1, %v702_v21 }
 0x454   : > { %928 = vmatpush.bf16.msrb.mxu3 %v1130_v13 }
 0x458   : > { %929 = vmatpush.bf16.msrb.mxu3 %v1129_v14 }
 0x45c   : > { %930 = vmatpush.bf16.msrb.mxu3 %v1128_v15 }
 0x4ad   : > { %v657_v22 = vpop.f32.mrf.mxu1 }
 0x4ae   : > { %662 = vrot.lane.b32.xlu0 %v657_v22, %s1297_s17  ;;  %s1049_s17 = sshll.u32 %s429_s23, 3 }
 0x4af   : > { %s431_s1 = scalar_lea.vmem [#allocation3], %s1049_s17  ;;  %s1242_s17 = scalar_lea.hbm %s1597_s13, 16 }
 0x4b5   : > { %v659_v23 = vpop.f32.mrf.mxu1 }
 0x4c5   : > { %v594_v24 = vpop.f32.mrf.mxu2 }
 0x4c6   : > { %599 = vrot.lane.b32.xlu1 %v594_v24, %s1298_s24  ;;  %s1119_s24 = sshll.u32 %s1392_s29, 3  ;;  %s983_s29 = sshll.u32 %s431_s1, 4  ;;  %s984_s29 = int_to_ptr.vmem [resolvable:$true] %s983_s29 }
 0x4c7   : > { %s981_s21 = scalar_lea.hbm %s1597_s13, %s1119_s24 }
 0x4c8   : > { %s985_s2 = sshll.u32 %s981_s21, 4  ;;  %s986_s2 = int_to_ptr.hbm [resolvable:$true] %s985_s2 }
 0x4c9   : > { %s1236_s15 = sshra.s32 %s986_s2, 4  ;;  %s1237_s15 = int_to_ptr.hbm [resolvable:$true] %s1236_s15 }
 0x4ca   : > { %s1238_s24 = scalar_lea.hbm %s1237_s15, 8  ;;  %p1243_p0 = scmp.lt.s32.totalorder %s1237_s15, %s1597_s13 }
 0x4cb   : > { %p1239_p11 = scmp.ne.s32.totalorder %s1237_s15, %s1238_s24  ;;  %p1244_p1 = scmp.lt.s32.totalorder %s1242_s17, %s1238_s24 }
 0x4cd   : > { %v596_v25 = vpop.f32.mrf.mxu2  ;;  %p1240_p12 = pnand %p1239_p11, %p1409_p5  ;;  %p1245_p2 = por %p1244_p1, %p1243_p0 }
 0x4cf   : > { %p1241_p13 = pneg %p1240_p12 }
 0x4d1   : > { %p1246_p3 = pnand %p1245_p2, %p1241_p13 }
 0x4d5   : > { %v720_v26 = vpop.f32.mrf.mxu2 }
 0x4d6   : > { %725 = vrot.lane.b32.xlu0 %v720_v26, %s1299_s30  ;;  %s971_s30 = scalar_lea.sflag [#allocation4], %s429_s23 }
 0x4dd   : > { %v722_v27 = vpop.f32.mrf.mxu2 }
 0x520   : > { %v663_v31 = vpop.permute.xlu0 %662 }
 0x538   : > { %v600_v30 = vpop.permute.xlu1 %599 }
 0x539   : > { %603 = vst.msk [vmem:[#allocation2] sm:$0xff] %vm602_vm4, %v600_v30 }
 0x53a   : > { %666 = vst.msk [vmem:[#allocation2] sm:$0xff] %vm665_vm5, %v663_v31 }
 0x548   : > { %v726_v32 = vpop.permute.xlu0 %725 }
 0x549   : > { %729 = vst.msk [vmem:[#allocation2] sm:$0xff] %vm728_vm6, %v726_v32 }
 0x550   : > { %v730_v33 = vld [vmem:[#allocation2] sm:$0xff] }
 0x551   : > { %v731_v34 = vpack.c.bf16 %v730_v33, %v730_v33 }
 0x553   : > { %1076 = vmatmul.msk.bf16.vlgmr.msra.gmra.mxu0 %vm459_vm0, %v731_v34 }
 0x5d0   : > { %v764_v36 = vpop.f32.mrf.mxu0 }
 0x5d1   : > { %v765_v37 = vadd.f32 %v1191_v35, %v764_v36 }
 0x5d3   : > { %v768_v38 = vadd.f32 %v765_v37, %v1430_v2 }
 0x5d5   : > { %v771_v39 = vsel %vm459_vm0, %v768_v38, 0.0 }
 0x5d6   : > { %772 = vadd.xlane.f32.xlu0 %v771_v39 }
 0x5d8   : > { %v766_v40 = vpop.f32.mrf.mxu0 }
 0x649   : > { %v773_v48 = vpop.xlane.xlu0 %772 }
 0x64a   : > { %v781_v49 = vmul.f32 %v1493_v47, %v773_v48 }
 0x64c   : > { %v782_v50 = vsub.f32 %v768_v38, %v781_v49 }
 0x64e   : > { %v783_v51 = vmul.f32 %v782_v50, %v782_v50 }
 0x650   : > { %v784_v2 = vsel %vm459_vm0, %v783_v51, 0.0 }
 0x651   : > { %785 = vadd.xlane.f32.xlu2 %v784_v2  ;;  %v1197_v2 = vld [vmem:[%s1596_s12] ss:$0 sm:$0xff] }
 0x6c4   : > { %v786_v55 = vpop.xlane.xlu2 %785 }
 0x6c5   : > { %v787_v56 = vmul.f32 %v786_v55, %v1493_v47 }
 0x6c7   : > { %v788_v58 = vadd.f32 1e-05, %v787_v56 }
 0x6c9   : > { %1216 = vrsqrt.f32 %v788_v58  ;;  %vm795_vm9 = vweird.f32 %v788_v58 }
 0x6cf   : > { %v1217_v59 = vpop.eup %1216 }
 0x6d0   : > { %v790_v60 = vmul.f32 %v1217_v59, %v788_v58  ;;  %vm796_vm8 = vweird.f32 %v1217_v59 }
 0x6d1   : > { %vm797_vm10 = vmor %vm795_vm9, %vm796_vm8 }
 0x6d2   : > { %v791_v61 = vmul.f32 %v1217_v59, %v790_v60 }
 0x6d4   : > { %v792_v62 = vmul.f32 0.5, %v791_v61 }
 0x6d6   : > { %v793_v63 = vsub.f32 1.5, %v792_v62 }
 0x6d8   : > { %v794_v0 = vmul.f32 %v1217_v59, %v793_v63 }
 0x6da   : > { %v798_v3 = vsel %vm797_vm10, %v1217_v59, %v794_v0 }
 0x6db   : > { %v799_v5 = vmul.f32 %v798_v3, %v782_v50  ;;  %v1196_v50 = vld [vmem:[%s1595_s11] ss:$0 sm:$0xff] }
 0x6dd   : > { %v803_v6 = vmul.f32 %v1192_v1, %v799_v5 }
 0x6df   : > { %v807_v8 = vadd.f32 %v1193_v4, %v803_v6 }
 0x6e1   : > { %v808_v9 = vpack.c.bf16 %v807_v8, %v807_v8 }
 0x6e3   : > { %1085 = vmatmul.msk.bf16.vlgmr.msra.gmra.mxu1 %vm459_vm0, %v808_v9 }
 0x760   : > { %v841_v17 = vpop.f32.mrf.mxu1 }
 0x761   : > { %v842_v18 = vadd.f32 %v1194_v16, %v841_v17 }
 0x763   : > { %v846_v19 = vmul.f32 0.044715, %v842_v18  ;;  %v845_v25 = vmul.f32 0.5, %v842_v18 }
 0x765   : > { %v847_v20 = vmul.f32 %v846_v19, %v842_v18 }
 0x767   : > { %v848_v7 = vmul.f32 %v847_v20, %v842_v18 }
 0x768   : > { %v843_v21 = vpop.f32.mrf.mxu1 }
 0x769   : > { %v849_v22 = vadd.f32 %v848_v7, %v842_v18 }
 0x76b   : > { %v850_v23 = vmul.f32 0.7978846, %v849_v22 }
 0x76d   : > { %1218 = vtanh.f32 %v850_v23 }
 0x773   : > { %v1219_v24 = vpop.eup %1218 }
 0x774   : > { %v852_v26 = vadd.f32 1.0, %v1219_v24 }
 0x776   : > { %v853_v27 = vmul.f32 %v852_v26, %v845_v25 }
 0x778   : > { %v854_v28 = vpack.c.bf16 %v853_v27, %v853_v27 }
 0x77a   : > { %931 = vmatmul.bf16.vlgmr.msrb.gmra.mxu3 %v854_v28 }
 0x7fd   : > { %v932_v30 = vpop.f32.mrf.mxu3 }
 0x7fe   : > { %v933_v31 = vadd.f32 %v1195_v29, %v932_v30 }
 0x800   : > { %v936_v32 = vadd.f32 %v933_v31, %v807_v8 }
 0x802   : > { %v939_v33 = vsel %vm459_vm0, %v936_v32, 0.0 }
 0x803   : > { %940 = vadd.xlane.f32.xlu1 %v939_v33 }
 0x805   : > { %v934_v34 = vpop.f32.mrf.mxu3 }
 0x876   : > { %v941_v35 = vpop.xlane.xlu1 %940 }
 0x877   : > { %v942_v36 = vmul.f32 %v941_v35, %v1493_v47 }
 0x879   : > { %v943_v37 = vsub.f32 %v936_v32, %v942_v36 }
 0x87b   : > { %v944_v38 = vmul.f32 %v943_v37, %v943_v37 }
 0x87d   : > { %v945_v39 = vsel %vm459_vm0, %v944_v38, 0.0 }
 0x87e   : > { %946 = vadd.xlane.f32.xlu0 %v945_v39 }
 0x8f1   : > { %v947_v40 = vpop.xlane.xlu0 %946 }
 0x8f2   : > { %v948_v41 = vmul.f32 %v947_v40, %v1493_v47 }
 0x8f4   : > { %v949_v42 = vadd.f32 1e-05, %v948_v41 }
 0x8f6   : > { %1220 = vrsqrt.f32 %v949_v42  ;;  %vm956_vm12 = vweird.f32 %v949_v42 }
 0x8fc   : > { %v1221_v43 = vpop.eup %1220 }
 0x8fd   : > { %v951_v44 = vmul.f32 %v1221_v43, %v949_v42  ;;  %vm957_vm11 = vweird.f32 %v1221_v43 }
 0x8fe   : > { %vm958_vm13 = vmor %vm956_vm12, %vm957_vm11 }
 0x8ff   : > { %v952_v45 = vmul.f32 %v1221_v43, %v951_v44 }
 0x901   : > { %v953_v46 = vmul.f32 0.5, %v952_v45 }
 0x903   : > { %v954_v48 = vsub.f32 1.5, %v953_v46 }
 0x905   : > { %v955_v49 = vmul.f32 %v1221_v43, %v954_v48 }
 0x907   : > { %v959_v47 = vsel %vm958_vm13, %v1221_v43, %v955_v49 }
 0x908   : > { %v960_v51 = vmul.f32 %v959_v47, %v943_v37 }
 0x90a   : > { %v964_v52 = vmul.f32 %v1196_v50, %v960_v51 }
 0x90c   : > { %v968_v53 = vadd.f32 %v1197_v2, %v964_v52 }
 0x90e   : > { %969 = vst.msk [vmem:[%s431_s1] sm:$0xff] %vm459_vm0, %v968_v53 }
 0x90f   : > { %1249 = shalt.err (!%p1246_p3)
}
 0x910   : > { %1136 = dma.vmem_to_hbm [thread:$0]  (%p1409_p5), %s984_s29, 128, %s986_s2, %s971_s30  }
 0x911 PF: > { %p1142_p4 = scmp.ge.s32.totalorder %s1284_s28, 2  ;;  %s997_s1 = sand.u32 1, %s1272_s25  }
 0x912   : > { %s998_s23 = scalar_lea.sflag [#allocation4], %s997_s1 }
 0x913   : > { %p1139_p7 = pnand %p1142_p4, %p1413_p6 }
 0x915   : > { %p1140_p8 = pneg %p1139_p7 }
 0x917   : > { %1267 = dma.done.wait (%p1140_p8), %s998_s23, 128  }
 0x918   : > { %1269 = vsyncadd (%p1140_p8), %s998_s23, 4294967168  ;;  %s1607_s22 = sld [smem:[#allocation6_spill]]  ;;  %p23_p9 = scmp.ge.s32.totalorder %s1396_s14, 4  }
 0x919   : > { %s1608_s25 = smov %s1276_s26  ;;  %s1609_s26 = smov %s1280_s27 }
 0x91a   : > { %s1611_s28 = smov %s1396_s14  ;;  %25 = sbr.rel (!%p23_p9) target bundleno = 7 (0x7), region = 107 }
 0x91e   : > { %s1610_s27 = smov %s1607_s22 }
 0x91f   :  { %1004 = vsyncpa [#allocation4], 1 }
 0x920   :  { %1006 = vsyncpa [#allocation4 + $0x1], 1 }

</bundles_post_ra>
